<compile_context>
chip_gen: v7x
topology: tpu7x:2x2x1
jax: 0.10.0
libtpu: 0.0.40
codegen_flags: <defaults>
</compile_context>

<pallas_src>
import jax
import jax.numpy as jnp
from jax import lax
from jax.experimental import pallas as pl
from jax.experimental.pallas import tpu as pltpu

EPS = 1e-5          # nn.BatchNorm1d default
NEG_SLOPE = 0.01    # nn.LeakyReLU default
HI = jax.lax.Precision.HIGHEST


def _leaky_relu(x):
    return jnp.where(x >= 0, x, NEG_SLOPE * x)


def _make_kernel(*, batch, block_b, h1_dim, h2_dim, out_dim, needs_mask):
    inv_b = 1.0 / float(batch)

    def kernel(x_ref, w1_ref, w2_ref, w3_ref, pvec_ref, out_ref,
               acc1_ref, acc2_ref):
        p = pl.program_id(0)   # phase: 0 = layer-1 stats, 1 = layer-2 stats, 2 = apply
        t = pl.program_id(1)   # batch tile

        x = x_ref[...]
        if needs_mask:
            # Zero out-of-range rows of the partial last tile so they never
            # inject garbage/NaN, and build a lane-oriented valid-row vector
            # that excludes them from the MXU statistic reductions.
            row = lax.broadcasted_iota(jnp.int32, (block_b, 1), 0)
            x = jnp.where(t * block_b + row < batch, x, jnp.zeros_like(x))
            lane = lax.broadcasted_iota(jnp.int32, (1, block_b), 1)
            vrow = (t * block_b + lane < batch).astype(jnp.float32)
        else:
            vrow = jnp.ones((1, block_b), jnp.float32)

        # Layer-1 pre-activation. b1 is dropped: training-mode BN subtracts the
        # batch mean, so any constant per-feature bias cancels exactly.
        h1 = jnp.dot(x, w1_ref[...], preferred_element_type=jnp.float32)

        def col_sums(h):
            # Per-feature sum / sum-of-squares over the batch tile, on the MXU
            # (an axis-0 reduce would otherwise burn VPU/XLU sublane reduces).
            s = jnp.dot(vrow, h, preferred_element_type=jnp.float32)
            q = jnp.dot(vrow, h * h, preferred_element_type=jnp.float32)
            return s, q

        def bn_scale_shift(acc_ref, gamma_row, beta_row, width):
            # Fold BatchNorm into one per-feature scale/shift; rsqrt runs on a
            # single (1, F) row (EUP), never broadcast to (B, F).
            mean = acc_ref[0:1, :] * inv_b
            var = jnp.maximum(acc_ref[1:2, :] * inv_b - mean * mean, 0.0)
            scale = pvec_ref[gamma_row:gamma_row + 1, 0:width] * lax.rsqrt(var + EPS)
            shift = pvec_ref[beta_row:beta_row + 1, 0:width] - mean * scale
            return scale, shift

        @pl.when((p == 0) & (t == 0))
        def _init():
            acc1_ref[...] = jnp.zeros_like(acc1_ref)
            acc2_ref[...] = jnp.zeros_like(acc2_ref)

        @pl.when(p < 2)
        def _placeholder():
            # Deterministic writeback for output tiles that are only finalized
            # in phase 2 (their phase-2 write is the last one to hit HBM).
            out_ref[...] = jnp.zeros_like(out_ref)

        @pl.when(p == 0)
        def _accum_layer1():
            s, q = col_sums(h1)
            acc1_ref[0:1, :] += s
            acc1_ref[1:2, :] += q

        @pl.when(p == 1)
        def _accum_layer2():
            sc1, sh1 = bn_scale_shift(acc1_ref, 0, 1, h1_dim)
            a1 = _leaky_relu(h1 * sc1 + sh1)
            h2 = jnp.dot(a1, w2_ref[...], preferred_element_type=jnp.float32)
            s, q = col_sums(h2)
            acc2_ref[0:1, :] += s
            acc2_ref[1:2, :] += q

        @pl.when(p == 2)
        def _apply():
            sc1, sh1 = bn_scale_shift(acc1_ref, 0, 1, h1_dim)
            a1 = _leaky_relu(h1 * sc1 + sh1)
            h2 = jnp.dot(a1, w2_ref[...], preferred_element_type=jnp.float32)
            sc2, sh2 = bn_scale_shift(acc2_ref, 2, 3, h2_dim)
            a2 = _leaky_relu(h2 * sc2 + sh2)
            out = jnp.dot(a2, w3_ref[...], preferred_element_type=jnp.float32)
            out_ref[...] = (out + pvec_ref[4:5, 0:out_dim]).astype(out_ref.dtype)

    return kernel


def income_degree_discriminator(x, params, alpha=1.0, *, block_b=None,
                                cast_to_bf16=True):
    """Forward pass. `alpha` only scales the gradient in the PyTorch backward
    (GradientReverse is identity in forward); accepted for parity, unused."""
    del alpha
    (w1, b1, g1, be1, w2, b2, g2, be2, w3, b3) = params
    del b1, b2  # mathematically cancelled by training-mode BatchNorm

    batch, in_dim = x.shape
    h1_dim, h2_dim, out_dim = w1.shape[1], w2.shape[1], w3.shape[1]

    if block_b is None:
        block_b = batch if batch <= 1024 else 512
    block_b = min(block_b, batch)
    sub = 16 if cast_to_bf16 else 8
    if block_b != batch and block_b % sub != 0:
        raise ValueError(f"block_b must equal batch or be a multiple of {sub}")
    n_tiles = pl.cdiv(batch, block_b)
    needs_mask = (batch % block_b) != 0

    # Pack the tiny per-feature vectors into one lane-dense (8, 128) slab:
    # row 0 = gamma1, 1 = beta1, 2 = gamma2, 3 = beta2, 4 = b3.
    pvec = jnp.zeros((8, 128), jnp.float32)
    pvec = pvec.at[0, :h1_dim].set(g1.reshape(-1).astype(jnp.float32))
    pvec = pvec.at[1, :h1_dim].set(be1.reshape(-1).astype(jnp.float32))
    pvec = pvec.at[2, :h2_dim].set(g2.reshape(-1).astype(jnp.float32))
    pvec = pvec.at[3, :h2_dim].set(be2.reshape(-1).astype(jnp.float32))
    pvec = pvec.at[4, :out_dim].set(b3.reshape(-1).astype(jnp.float32))

    in_dtype = jnp.bfloat16 if cast_to_bf16 else jnp.float32
    x_in = x.astype(in_dtype)
    w1_in = w1.astype(in_dtype)

    kernel = _make_kernel(batch=batch, block_b=block_b, h1_dim=h1_dim,
                          h2_dim=h2_dim, out_dim=out_dim, needs_mask=needs_mask)

    return pl.pallas_call(
        kernel,
        out_shape=jax.ShapeDtypeStruct((batch, out_dim), jnp.float32),
        grid=(3, n_tiles),  # phase-major, batch tiles innermost
        in_specs=[
            pl.BlockSpec((block_b, in_dim), lambda p, t: (t, 0)),   # x tile
            pl.BlockSpec((in_dim, h1_dim), lambda p, t: (0, 0)),    # W1 (resident)
            pl.BlockSpec((h1_dim, h2_dim), lambda p, t: (0, 0)),    # W2 (resident)
            pl.BlockSpec((h2_dim, out_dim), lambda p, t: (0, 0)),   # W3 (resident)
            pl.BlockSpec((8, 128), lambda p, t: (0, 0)),            # packed vectors
        ],
        out_specs=pl.BlockSpec((block_b, out_dim), lambda p, t: (t, 0)),
        scratch_shapes=[
            pltpu.VMEM((2, h1_dim), jnp.float32),   # [sum; sumsq] layer 1
            pltpu.VMEM((2, h2_dim), jnp.float32),   # [sum; sumsq] layer 2
        ],
        compiler_params=pltpu.CompilerParams(
            # Both axes carry cross-step state (BN accumulators), so neither is
            # megacore-parallel; splitting the apply phase into its own call
            # would be required to enable "parallel" on v7x.
            dimension_semantics=("arbitrary", "arbitrary"),
            vmem_limit_bytes=32 * 1024 * 1024,
        ),
    )(x_in, w1_in, w2.astype(jnp.float32), w3.astype(jnp.float32), pvec)


def init_params(key, input_dim):
    """Parameter shapes per the module's __init__ (b1/b2 kept for parity even
    though the kernel proves they cancel under training-mode BN)."""
    ks = jax.random.split(key, 10)

    def linear(kw, kb, fan_in, fan_out):
        bound = 1.0 / float(fan_in) ** 0.5
        w = jax.random.uniform(kw, (fan_in, fan_out), jnp.float32, -bound, bound)
        b = jax.random.uniform(kb, (1, fan_out), jnp.float32, -bound, bound)
        return w, b

    w1, b1 = linear(ks[0], ks[1], input_dim, 36)
    w2, b2 = linear(ks[2], ks[3], 36, 10)
    w3, b3 = linear(ks[4], ks[5], 10, 2)
    # PyTorch default is gamma=1, beta=0; perturb slightly so the test actually
    # exercises the affine path.
    g1 = 1.0 + 0.1 * jax.random.normal(ks[6], (1, 36), jnp.float32)
    be1 = 0.1 * jax.random.normal(ks[7], (1, 36), jnp.float32)
    g2 = 1.0 + 0.1 * jax.random.normal(ks[8], (1, 10), jnp.float32)
    be2 = 0.1 * jax.random.normal(ks[9], (1, 10), jnp.float32)
    return (w1, b1, g1, be1, w2, b2, g2, be2, w3, b3)


def reference_forward(x, params):
    """Strict f32 mirror of the PyTorch module (training-mode BatchNorm)."""
    (w1, b1, g1, be1, w2, b2, g2, be2, w3, b3) = params

    def bn(h, g, b):
        m = jnp.mean(h, axis=0, keepdims=True)
        v = jnp.mean((h - m) ** 2, axis=0, keepdims=True)
        return (h - m) / jnp.sqrt(v + EPS) * g + b

    h = _leaky_relu(bn(jnp.dot(x, w1, precision=HI) + b1, g1, be1))
    h = _leaky_relu(bn(jnp.dot(h, w2, precision=HI) + b2, g2, be2))
    return jnp.dot(h, w3, precision=HI) + b3


def reference_kernel_math(x, params, cast_to_bf16=True):
    """Pure-JAX mirror of the kernel's numerics (optional bf16 first matmul,
    no b1/b2, one-pass variance, folded scale/shift)."""
    (w1, b1, g1, be1, w2, b2, g2, be2, w3, b3) = params

    def bn(h, g, b):
        m = jnp.mean(h, axis=0, keepdims=True)
        v = jnp.maximum(jnp.mean(h * h, axis=0, keepdims=True) - m * m, 0.0)
        scale = g * lax.rsqrt(v + EPS)
        return h * scale + (b - m * scale)

    if cast_to_bf16:
        h1 = jnp.dot(x.astype(jnp.bfloat16), w1.astype(jnp.bfloat16),
                     preferred_element_type=jnp.float32)
    else:
        h1 = jnp.dot(x, w1, precision=HI)
    a1 = _leaky_relu(bn(h1, g1, be1))
    a2 = _leaky_relu(bn(jnp.dot(a1, w2, precision=HI), g2, be2))
    return jnp.dot(a2, w3, precision=HI) + b3


if __name__ == "__main__":
    key = jax.random.PRNGKey(0)
    k_x, k_p = jax.random.split(key)
    input_dim = 16
    params = init_params(k_p, input_dim)

    # (batch, batch tile, bf16 input): single resident tile, multi-tile with a
    # partial masked last tile, and the full-f32 path.
    cases = [
        (64, None, True),
        (200, 64, True),
        (64, None, False),
    ]
    for batch, blk, cast in cases:
        xk = jax.random.fold_in(k_x, batch)
        x = jax.random.normal(xk, (batch, input_dim), jnp.float32)

        out = income_degree_discriminator(x, params, alpha=0.5,
                                          block_b=blk, cast_to_bf16=cast)
        out = jax.block_until_ready(out)
        assert out.shape == (batch, 2), (batch, out.shape)

        mirror = reference_kernel_math(x, params, cast_to_bf16=cast)
        tol = 3e-3 if cast else 1e-3
        assert jnp.allclose(out, mirror, atol=tol, rtol=tol), (
            "mirror mismatch", batch, blk, cast,
            float(jnp.max(jnp.abs(out - mirror))))

        strict = reference_forward(x, params)
        tol = 8e-2 if cast else 2e-3
        assert jnp.allclose(out, strict, atol=tol, rtol=tol), (
            "strict mismatch", batch, blk, cast,
            float(jnp.max(jnp.abs(out - strict))))

    print("KERNEL_OK")
</pallas_src>

<mosaic_0001>
module attributes {stable_mosaic.version = 11 : i64} {
  func.func @kernel(%arg0: i32, %arg1: i32, %arg2: memref<64x16xbf16, #tpu.memory_space<vmem>>, %arg3: memref<16x36xbf16, #tpu.memory_space<vmem>>, %arg4: memref<36x10xf32, #tpu.memory_space<vmem>>, %arg5: memref<10x2xf32, #tpu.memory_space<vmem>>, %arg6: memref<8x128xf32, #tpu.memory_space<vmem>>, %arg7: memref<64x2xf32, #tpu.memory_space<vmem>>, %arg8: memref<2x36xf32, #tpu.memory_space<vmem>>, %arg9: memref<2x10xf32, #tpu.memory_space<vmem>>) attributes {dimension_semantics = [#tpu.dimension_semantics<arbitrary>, #tpu.dimension_semantics<arbitrary>], iteration_bounds = array<i64: 3, 1>, scalar_prefetch = 0 : i64, scratch_operands = 2 : i64, tpu.core_type = #tpu.core_type<tc>, window_params = [{transform_indices = @transform_0, window_bounds = array<i64: 64, 16>}, {pipeline_mode = #tpu.pipeline_mode<synchronous>, transform_indices = @transform_1, window_bounds = array<i64: 16, 36>}, {pipeline_mode = #tpu.pipeline_mode<synchronous>, transform_indices = @transform_2, window_bounds = array<i64: 36, 10>}, {pipeline_mode = #tpu.pipeline_mode<synchronous>, transform_indices = @transform_3, window_bounds = array<i64: 10, 2>}, {pipeline_mode = #tpu.pipeline_mode<synchronous>, transform_indices = @transform_4, window_bounds = array<i64: 8, 128>}, {transform_indices = @transform_5, window_bounds = array<i64: 64, 2>}]} {
    %c0 = arith.constant 0 : index
    %c0_0 = arith.constant 0 : index
    %0 = vector.load %arg2[%c0, %c0_0] : memref<64x16xbf16, #tpu.memory_space<vmem>>, vector<64x16xbf16>
    %cst = arith.constant 1.000000e+00 : f32
    %1 = vector.broadcast %cst : f32 to vector<1x64xf32>
    %c0_1 = arith.constant 0 : index
    %c0_2 = arith.constant 0 : index
    %2 = vector.load %arg3[%c0_1, %c0_2] : memref<16x36xbf16, #tpu.memory_space<vmem>>, vector<16x36xbf16>
    %cst_3 = arith.constant dense<0.000000e+00> : vector<64x36xf32>
    %3 = tpu.matmul %0, %2, %cst_3 {dimension_numbers = #tpu.dot_dimension_numbers<[1], [0], [0], [1], [0, 0, 1, 1], [], []>} : vector<64x16xbf16>, vector<16x36xbf16>, vector<64x36xf32> -> vector<64x36xf32>
    %c0_i32 = arith.constant 0 : i32
    %4 = arith.cmpi eq, %arg0, %c0_i32 : i32
    %c0_i32_4 = arith.constant 0 : i32
    %5 = arith.cmpi eq, %arg1, %c0_i32_4 : i32
    %6 = arith.andi %4, %5 : i1
    %7 = arith.extui %6 : i1 to i32
    %c0_i32_5 = arith.constant 0 : i32
    %8 = arith.cmpi ne, %7, %c0_i32_5 : i32
    scf.if %8 {
      %cst_12 = arith.constant 0.000000e+00 : f32
      %21 = vector.broadcast %cst_12 : f32 to vector<2x36xf32>
      %c0_13 = arith.constant 0 : index
      %c0_14 = arith.constant 0 : index
      %22 = vector.load %arg8[%c0_13, %c0_14] : memref<2x36xf32, #tpu.memory_space<vmem>>, vector<2x36xf32>
      tpu.vector_store %arg8[%c0_13, %c0_14], %21 {strides = array<i32>} : memref<2x36xf32, #tpu.memory_space<vmem>>, vector<2x36xf32>,
      %cst_15 = arith.constant 0.000000e+00 : f32
      %23 = vector.broadcast %cst_15 : f32 to vector<2x10xf32>
      %c0_16 = arith.constant 0 : index
      %c0_17 = arith.constant 0 : index
      %24 = vector.load %arg9[%c0_16, %c0_17] : memref<2x10xf32, #tpu.memory_space<vmem>>, vector<2x10xf32>
      tpu.vector_store %arg9[%c0_16, %c0_17], %23 {strides = array<i32>} : memref<2x10xf32, #tpu.memory_space<vmem>>, vector<2x10xf32>,
    } else {
    }
    %c2_i32 = arith.constant 2 : i32
    %9 = arith.cmpi slt, %arg0, %c2_i32 : i32
    %10 = arith.extui %9 : i1 to i32
    %c0_i32_6 = arith.constant 0 : i32
    %11 = arith.cmpi ne, %10, %c0_i32_6 : i32
    scf.if %11 {
      %cst_12 = arith.constant 0.000000e+00 : f32
      %21 = vector.broadcast %cst_12 : f32 to vector<64x2xf32>
      %c0_13 = arith.constant 0 : index
      %c0_14 = arith.constant 0 : index
      %22 = vector.load %arg7[%c0_13, %c0_14] : memref<64x2xf32, #tpu.memory_space<vmem>>, vector<64x2xf32>
      tpu.vector_store %arg7[%c0_13, %c0_14], %21 {strides = array<i32>} : memref<64x2xf32, #tpu.memory_space<vmem>>, vector<64x2xf32>,
    } else {
    }
    %c0_i32_7 = arith.constant 0 : i32
    %12 = arith.cmpi eq, %arg0, %c0_i32_7 : i32
    %13 = arith.extui %12 : i1 to i32
    %c0_i32_8 = arith.constant 0 : i32
    %14 = arith.cmpi ne, %13, %c0_i32_8 : i32
    scf.if %14 {
      %cst_12 = arith.constant dense<0.000000e+00> : vector<1x36xf32>
      %21 = tpu.matmul %1, %3, %cst_12 {dimension_numbers = #tpu.dot_dimension_numbers<[1], [0], [0], [1], [0, 0, 1, 1], [], []>} : vector<1x64xf32>, vector<64x36xf32>, vector<1x36xf32> -> vector<1x36xf32>
      %22 = arith.mulf %3, %3 : vector<64x36xf32>
      %cst_13 = arith.constant dense<0.000000e+00> : vector<1x36xf32>
      %23 = tpu.matmul %1, %22, %cst_13 {dimension_numbers = #tpu.dot_dimension_numbers<[1], [0], [0], [1], [0, 0, 1, 1], [], []>} : vector<1x64xf32>, vector<64x36xf32>, vector<1x36xf32> -> vector<1x36xf32>
      %c0_14 = arith.constant 0 : index
      %c0_15 = arith.constant 0 : index
      %24 = vector.load %arg8[%c0_14, %c0_15] : memref<2x36xf32, #tpu.memory_space<vmem>>, vector<1x36xf32>
      %25 = arith.addf %24, %21 : vector<1x36xf32>
      %c0_16 = arith.constant 0 : index
      %c0_17 = arith.constant 0 : index
      %26 = vector.load %arg8[%c0_16, %c0_17] : memref<2x36xf32, #tpu.memory_space<vmem>>, vector<1x36xf32>
      tpu.vector_store %arg8[%c0_16, %c0_17], %25 {strides = array<i32>} : memref<2x36xf32, #tpu.memory_space<vmem>>, vector<1x36xf32>,
      %c1 = arith.constant 1 : index
      %c0_18 = arith.constant 0 : index
      %27 = vector.load %arg8[%c1, %c0_18] : memref<2x36xf32, #tpu.memory_space<vmem>>, vector<1x36xf32>
      %28 = arith.addf %27, %23 : vector<1x36xf32>
      %c1_19 = arith.constant 1 : index
      %c0_20 = arith.constant 0 : index
      %29 = vector.load %arg8[%c1_19, %c0_20] : memref<2x36xf32, #tpu.memory_space<vmem>>, vector<1x36xf32>
      tpu.vector_store %arg8[%c1_19, %c0_20], %28 {strides = array<i32>} : memref<2x36xf32, #tpu.memory_space<vmem>>, vector<1x36xf32>,
    } else {
    }
    %c1_i32 = arith.constant 1 : i32
    %15 = arith.cmpi eq, %arg0, %c1_i32 : i32
    %16 = arith.extui %15 : i1 to i32
    %c0_i32_9 = arith.constant 0 : i32
    %17 = arith.cmpi ne, %16, %c0_i32_9 : i32
    scf.if %17 {
      %c0_12 = arith.constant 0 : index
      %c0_13 = arith.constant 0 : index
      %21 = vector.load %arg8[%c0_12, %c0_13] : memref<2x36xf32, #tpu.memory_space<vmem>>, vector<1x36xf32>
      %cst_14 = arith.constant 1.562500e-02 : f32
      %22 = vector.broadcast %cst_14 : f32 to vector<1x36xf32>
      %23 = arith.mulf %21, %22 : vector<1x36xf32>
      %c1 = arith.constant 1 : index
      %c0_15 = arith.constant 0 : index
      %24 = vector.load %arg8[%c1, %c0_15] : memref<2x36xf32, #tpu.memory_space<vmem>>, vector<1x36xf32>
      %cst_16 = arith.constant 1.562500e-02 : f32
      %25 = vector.broadcast %cst_16 : f32 to vector<1x36xf32>
      %26 = arith.mulf %24, %25 : vector<1x36xf32>
      %27 = arith.mulf %23, %23 : vector<1x36xf32>
      %28 = arith.subf %26, %27 : vector<1x36xf32>
      %cst_17 = arith.constant 0.000000e+00 : f32
      %29 = vector.broadcast %cst_17 : f32 to vector<1x36xf32>
      %30 = arith.maximumf %28, %29 : vector<1x36xf32>
      %c0_18 = arith.constant 0 : index
      %c0_19 = arith.constant 0 : index
      %31 = vector.load %arg6[%c0_18, %c0_19] : memref<8x128xf32, #tpu.memory_space<vmem>>, vector<1x36xf32>
      %cst_20 = arith.constant 9.99999974E-6 : f32
      %32 = vector.broadcast %cst_20 : f32 to vector<1x36xf32>
      %33 = arith.addf %30, %32 : vector<1x36xf32>
      %34 = math.rsqrt %33 : vector<1x36xf32>
      %35 = arith.mulf %31, %34 : vector<1x36xf32>
      %c1_21 = arith.constant 1 : index
      %c0_22 = arith.constant 0 : index
      %36 = vector.load %arg6[%c1_21, %c0_22] : memref<8x128xf32, #tpu.memory_space<vmem>>, vector<1x36xf32>
      %37 = arith.mulf %23, %35 : vector<1x36xf32>
      %38 = arith.subf %36, %37 : vector<1x36xf32>
      %39 = vector.broadcast %35 : vector<1x36xf32> to vector<64x36xf32>
      %40 = arith.mulf %3, %39 : vector<64x36xf32>
      %41 = vector.broadcast %38 : vector<1x36xf32> to vector<64x36xf32>
      %42 = arith.addf %40, %41 : vector<64x36xf32>
      %cst_23 = arith.constant 0.000000e+00 : f32
      %43 = vector.broadcast %cst_23 : f32 to vector<64x36xf32>
      %44 = arith.cmpf oge, %42, %43 : vector<64x36xf32>
      %cst_24 = arith.constant 0.00999999977 : f32
      %45 = vector.broadcast %cst_24 : f32 to vector<64x36xf32>
      %46 = arith.mulf %45, %42 : vector<64x36xf32>
      %47 = arith.select %44, %42, %46 : vector<64x36xi1>, vector<64x36xf32>
      %c0_25 = arith.constant 0 : index
      %c0_26 = arith.constant 0 : index
      %48 = vector.load %arg4[%c0_25, %c0_26] : memref<36x10xf32, #tpu.memory_space<vmem>>, vector<36x10xf32>
      %cst_27 = arith.constant dense<0.000000e+00> : vector<64x10xf32>
      %49 = tpu.matmul %47, %48, %cst_27 {dimension_numbers = #tpu.dot_dimension_numbers<[1], [0], [0], [1], [0, 0, 1, 1], [], []>} : vector<64x36xf32>, vector<36x10xf32>, vector<64x10xf32> -> vector<64x10xf32>
      %cst_28 = arith.constant dense<0.000000e+00> : vector<1x10xf32>
      %50 = tpu.matmul %1, %49, %cst_28 {dimension_numbers = #tpu.dot_dimension_numbers<[1], [0], [0], [1], [0, 0, 1, 1], [], []>} : vector<1x64xf32>, vector<64x10xf32>, vector<1x10xf32> -> vector<1x10xf32>
      %51 = arith.mulf %49, %49 : vector<64x10xf32>
      %cst_29 = arith.constant dense<0.000000e+00> : vector<1x10xf32>
      %52 = tpu.matmul %1, %51, %cst_29 {dimension_numbers = #tpu.dot_dimension_numbers<[1], [0], [0], [1], [0, 0, 1, 1], [], []>} : vector<1x64xf32>, vector<64x10xf32>, vector<1x10xf32> -> vector<1x10xf32>
      %c0_30 = arith.constant 0 : index
      %c0_31 = arith.constant 0 : index
      %53 = vector.load %arg9[%c0_30, %c0_31] : memref<2x10xf32, #tpu.memory_space<vmem>>, vector<1x10xf32>
      %54 = arith.addf %53, %50 : vector<1x10xf32>
      %c0_32 = arith.constant 0 : index
      %c0_33 = arith.constant 0 : index
      %55 = vector.load %arg9[%c0_32, %c0_33] : memref<2x10xf32, #tpu.memory_space<vmem>>, vector<1x10xf32>
      tpu.vector_store %arg9[%c0_32, %c0_33], %54 {strides = array<i32>} : memref<2x10xf32, #tpu.memory_space<vmem>>, vector<1x10xf32>,
      %c1_34 = arith.constant 1 : index
      %c0_35 = arith.constant 0 : index
      %56 = vector.load %arg9[%c1_34, %c0_35] : memref<2x10xf32, #tpu.memory_space<vmem>>, vector<1x10xf32>
      %57 = arith.addf %56, %52 : vector<1x10xf32>
      %c1_36 = arith.constant 1 : index
      %c0_37 = arith.constant 0 : index
      %58 = vector.load %arg9[%c1_36, %c0_37] : memref<2x10xf32, #tpu.memory_space<vmem>>, vector<1x10xf32>
      tpu.vector_store %arg9[%c1_36, %c0_37], %57 {strides = array<i32>} : memref<2x10xf32, #tpu.memory_space<vmem>>, vector<1x10xf32>,
    } else {
    }
    %c2_i32_10 = arith.constant 2 : i32
    %18 = arith.cmpi eq, %arg0, %c2_i32_10 : i32
    %19 = arith.extui %18 : i1 to i32
    %c0_i32_11 = arith.constant 0 : i32
    %20 = arith.cmpi ne, %19, %c0_i32_11 : i32
    scf.if %20 {
      %c0_12 = arith.constant 0 : index
      %c0_13 = arith.constant 0 : index
      %21 = vector.load %arg8[%c0_12, %c0_13] : memref<2x36xf32, #tpu.memory_space<vmem>>, vector<1x36xf32>
      %cst_14 = arith.constant 1.562500e-02 : f32
      %22 = vector.broadcast %cst_14 : f32 to vector<1x36xf32>
      %23 = arith.mulf %21, %22 : vector<1x36xf32>
      %c1 = arith.constant 1 : index
      %c0_15 = arith.constant 0 : index
      %24 = vector.load %arg8[%c1, %c0_15] : memref<2x36xf32, #tpu.memory_space<vmem>>, vector<1x36xf32>
      %cst_16 = arith.constant 1.562500e-02 : f32
      %25 = vector.broadcast %cst_16 : f32 to vector<1x36xf32>
      %26 = arith.mulf %24, %25 : vector<1x36xf32>
      %27 = arith.mulf %23, %23 : vector<1x36xf32>
      %28 = arith.subf %26, %27 : vector<1x36xf32>
      %cst_17 = arith.constant 0.000000e+00 : f32
      %29 = vector.broadcast %cst_17 : f32 to vector<1x36xf32>
      %30 = arith.maximumf %28, %29 : vector<1x36xf32>
      %c0_18 = arith.constant 0 : index
      %c0_19 = arith.constant 0 : index
      %31 = vector.load %arg6[%c0_18, %c0_19] : memref<8x128xf32, #tpu.memory_space<vmem>>, vector<1x36xf32>
      %cst_20 = arith.constant 9.99999974E-6 : f32
      %32 = vector.broadcast %cst_20 : f32 to vector<1x36xf32>
      %33 = arith.addf %30, %32 : vector<1x36xf32>
      %34 = math.rsqrt %33 : vector<1x36xf32>
      %35 = arith.mulf %31, %34 : vector<1x36xf32>
      %c1_21 = arith.constant 1 : index
      %c0_22 = arith.constant 0 : index
      %36 = vector.load %arg6[%c1_21, %c0_22] : memref<8x128xf32, #tpu.memory_space<vmem>>, vector<1x36xf32>
      %37 = arith.mulf %23, %35 : vector<1x36xf32>
      %38 = arith.subf %36, %37 : vector<1x36xf32>
      %39 = vector.broadcast %35 : vector<1x36xf32> to vector<64x36xf32>
      %40 = arith.mulf %3, %39 : vector<64x36xf32>
      %41 = vector.broadcast %38 : vector<1x36xf32> to vector<64x36xf32>
      %42 = arith.addf %40, %41 : vector<64x36xf32>
      %cst_23 = arith.constant 0.000000e+00 : f32
      %43 = vector.broadcast %cst_23 : f32 to vector<64x36xf32>
      %44 = arith.cmpf oge, %42, %43 : vector<64x36xf32>
      %cst_24 = arith.constant 0.00999999977 : f32
      %45 = vector.broadcast %cst_24 : f32 to vector<64x36xf32>
      %46 = arith.mulf %45, %42 : vector<64x36xf32>
      %47 = arith.select %44, %42, %46 : vector<64x36xi1>, vector<64x36xf32>
      %c0_25 = arith.constant 0 : index
      %c0_26 = arith.constant 0 : index
      %48 = vector.load %arg4[%c0_25, %c0_26] : memref<36x10xf32, #tpu.memory_space<vmem>>, vector<36x10xf32>
      %cst_27 = arith.constant dense<0.000000e+00> : vector<64x10xf32>
      %49 = tpu.matmul %47, %48, %cst_27 {dimension_numbers = #tpu.dot_dimension_numbers<[1], [0], [0], [1], [0, 0, 1, 1], [], []>} : vector<64x36xf32>, vector<36x10xf32>, vector<64x10xf32> -> vector<64x10xf32>
      %c0_28 = arith.constant 0 : index
      %c0_29 = arith.constant 0 : index
      %50 = vector.load %arg9[%c0_28, %c0_29] : memref<2x10xf32, #tpu.memory_space<vmem>>, vector<1x10xf32>
      %cst_30 = arith.constant 1.562500e-02 : f32
      %51 = vector.broadcast %cst_30 : f32 to vector<1x10xf32>
      %52 = arith.mulf %50, %51 : vector<1x10xf32>
      %c1_31 = arith.constant 1 : index
      %c0_32 = arith.constant 0 : index
      %53 = vector.load %arg9[%c1_31, %c0_32] : memref<2x10xf32, #tpu.memory_space<vmem>>, vector<1x10xf32>
      %cst_33 = arith.constant 1.562500e-02 : f32
      %54 = vector.broadcast %cst_33 : f32 to vector<1x10xf32>
      %55 = arith.mulf %53, %54 : vector<1x10xf32>
      %56 = arith.mulf %52, %52 : vector<1x10xf32>
      %57 = arith.subf %55, %56 : vector<1x10xf32>
      %cst_34 = arith.constant 0.000000e+00 : f32
      %58 = vector.broadcast %cst_34 : f32 to vector<1x10xf32>
      %59 = arith.maximumf %57, %58 : vector<1x10xf32>
      %c2 = arith.constant 2 : index
      %c0_35 = arith.constant 0 : index
      %60 = vector.load %arg6[%c2, %c0_35] : memref<8x128xf32, #tpu.memory_space<vmem>>, vector<1x10xf32>
      %cst_36 = arith.constant 9.99999974E-6 : f32
      %61 = vector.broadcast %cst_36 : f32 to vector<1x10xf32>
      %62 = arith.addf %59, %61 : vector<1x10xf32>
      %63 = math.rsqrt %62 : vector<1x10xf32>
      %64 = arith.mulf %60, %63 : vector<1x10xf32>
      %c3 = arith.constant 3 : index
      %c0_37 = arith.constant 0 : index
      %65 = vector.load %arg6[%c3, %c0_37] : memref<8x128xf32, #tpu.memory_space<vmem>>, vector<1x10xf32>
      %66 = arith.mulf %52, %64 : vector<1x10xf32>
      %67 = arith.subf %65, %66 : vector<1x10xf32>
      %68 = vector.broadcast %64 : vector<1x10xf32> to vector<64x10xf32>
      %69 = arith.mulf %49, %68 : vector<64x10xf32>
      %70 = vector.broadcast %67 : vector<1x10xf32> to vector<64x10xf32>
      %71 = arith.addf %69, %70 : vector<64x10xf32>
      %cst_38 = arith.constant 0.000000e+00 : f32
      %72 = vector.broadcast %cst_38 : f32 to vector<64x10xf32>
      %73 = arith.cmpf oge, %71, %72 : vector<64x10xf32>
      %cst_39 = arith.constant 0.00999999977 : f32
      %74 = vector.broadcast %cst_39 : f32 to vector<64x10xf32>
      %75 = arith.mulf %74, %71 : vector<64x10xf32>
      %76 = arith.select %73, %71, %75 : vector<64x10xi1>, vector<64x10xf32>
      %c0_40 = arith.constant 0 : index
      %c0_41 = arith.constant 0 : index
      %77 = vector.load %arg5[%c0_40, %c0_41] : memref<10x2xf32, #tpu.memory_space<vmem>>, vector<10x2xf32>
      %cst_42 = arith.constant dense<0.000000e+00> : vector<64x2xf32>
      %78 = tpu.matmul %76, %77, %cst_42 {dimension_numbers = #tpu.dot_dimension_numbers<[1], [0], [0], [1], [0, 0, 1, 1], [], []>} : vector<64x10xf32>, vector<10x2xf32>, vector<64x2xf32> -> vector<64x2xf32>
      %c4 = arith.constant 4 : index
      %c0_43 = arith.constant 0 : index
      %79 = vector.load %arg6[%c4, %c0_43] : memref<8x128xf32, #tpu.memory_space<vmem>>, vector<1x2xf32>
      %80 = vector.broadcast %79 : vector<1x2xf32> to vector<64x2xf32>
      %81 = arith.addf %78, %80 : vector<64x2xf32>
      %c0_44 = arith.constant 0 : index
      %c0_45 = arith.constant 0 : index
      %82 = vector.load %arg7[%c0_44, %c0_45] : memref<64x2xf32, #tpu.memory_space<vmem>>, vector<64x2xf32>
      tpu.vector_store %arg7[%c0_44, %c0_45], %81 {strides = array<i32>} : memref<64x2xf32, #tpu.memory_space<vmem>>, vector<64x2xf32>,
    } else {
    }
    return
  }
  func.func @transform_0(%arg0: i32, %arg1: i32) -> (i32, i32) {
    %c0_i32 = arith.constant 0 : i32
    %c0_i32_0 = arith.constant 0 : i32
    return %arg1, %c0_i32 : i32, i32
  }
  func.func @transform_1(%arg0: i32, %arg1: i32) -> (i32, i32) {
    %c0_i32 = arith.constant 0 : i32
    %c0_i32_0 = arith.constant 0 : i32
    %c0_i32_1 = arith.constant 0 : i32
    return %c0_i32, %c0_i32_0 : i32, i32
  }
  func.func @transform_2(%arg0: i32, %arg1: i32) -> (i32, i32) {
    %c0_i32 = arith.constant 0 : i32
    %c0_i32_0 = arith.constant 0 : i32
    %c0_i32_1 = arith.constant 0 : i32
    return %c0_i32, %c0_i32_0 : i32, i32
  }
  func.func @transform_3(%arg0: i32, %arg1: i32) -> (i32, i32) {
    %c0_i32 = arith.constant 0 : i32
    %c0_i32_0 = arith.constant 0 : i32
    %c0_i32_1 = arith.constant 0 : i32
    return %c0_i32, %c0_i32_0 : i32, i32
  }
  func.func @transform_4(%arg0: i32, %arg1: i32) -> (i32, i32) {
    %c0_i32 = arith.constant 0 : i32
    %c0_i32_0 = arith.constant 0 : i32
    %c0_i32_1 = arith.constant 0 : i32
    return %c0_i32, %c0_i32_0 : i32, i32
  }
  func.func @transform_5(%arg0: i32, %arg1: i32) -> (i32, i32) {
    %c0_i32 = arith.constant 0 : i32
    %c0_i32_0 = arith.constant 0 : i32
    return %arg1, %c0_i32 : i32, i32
  }
}

</mosaic_0001>

<bundles_post_ra>
// kernel: tpu_custom_call.1
= control target key start
LH: loop header
LB: loop body
LE: loop exit
PB: predicated region body
PF: predicated region fallthrough
CT: control target
= control target key end

     0   :  { %s1847_s18 = smov 0   ;;  %s1849_s19 = smov 0   ;;  %s2095_s0 = inlined_call_operand.vmem [shape: bf16[64,16], index: 0, kind: input, shape index: {}]   ;;  %s2096_s1 = inlined_call_operand.vmem [shape: bf16[16,36], index: 1, kind: input, shape index: {}]   ;;  %s2097_s2 = inlined_call_operand.vmem [shape: f32[36,10], index: 2, kind: input, shape index: {}]   ;;  %s2098_s3 = inlined_call_operand.vmem [shape: f32[10,2], index: 3, kind: input, shape index: {}]   ;;  %s2099_s4 = inlined_call_operand.vmem [shape: f32[8,128], index: 4, kind: input, shape index: {}]   ;;  %s2100_s5 = inlined_call_operand.vmem [shape: f32[64,2], index: 5, kind: output, shape index: {}]  }
   0x1   :  { %s1851_s20 = smov 0  }
   0x2 LB: > { %s27_s21 = sadd.s32 1, %s1800_s19  ;;  %p1389_p0 = scmp.ge.s32.totalorder %s1804_s20, 1  ;;  %s1804_s20 = sphi %s1851_s20, %s15_s20   ;;  %s1800_s19 = sphi %s1849_s19, %s2102_s19   ;;  %s1796_s18 = sphi %s1847_s18, %s2101_s18  }
   0x3   : > { %p29_p1 = scmp.ge.s32.totalorder %s27_s21, 3  ;;  %p200_p2 = scmp.lt.s32.totalorder %s1804_s20, 4 }
   0x5   : > { %s2104_s21 = smov (%p29_p1, %s27_s21), 0  ;;  %p201_p3 = pnand %p1389_p0, %p200_p2 }
   0x6   : > { %v1771_v0 = vld [vmem:[%s2096_s1] sm:$0xff] (!%p201_p3)   ;;  %vm277_vm0 = vcmask (!%p201_p3), 130048   ;;  %v1773_v2 = vld [vmem:[%s2095_s0 + $0x10] sm:$0xff] (!%p201_p3)   ;;  %v1774_v3 = vld [vmem:[%s2095_s0 + $0x8] sm:$0xff] (!%p201_p3)   ;;  %p355_p4 = scmp.eq.s32.totalorder (!%p201_p3), %s1796_s18, 0 }
   0x7   : > { %204 = sbr.rel (%p201_p3) target bundleno = 1444 (0x5a4), region = 40  ;;  %v1772_v1 = vld [vmem:[%s2095_s0] sm:$0xff] (!%p201_p3)   ;;  %1518 = vmatprep.subr.bf16.mxu0 (!%p201_p3), %v1771_v0  ;;  %1734 = vmatprep.subr.bf16.mxu1 (!%p201_p3), %v1771_v0  ;;  %v1775_v4 = vld [vmem:[%s2095_s0 + $0x18] sm:$0xff] (!%p201_p3)  }
   0x8   : > { %1519 = vmatpush3.bf16.msra.mxu0 (!%p201_p3), %v1771_v0  ;;  %1735 = vmatpush3.bf16.msra.mxu1 (!%p201_p3), %v1771_v0 }
   0x9   : > { %1520 = vmatprep.mubr.msk.bf16.mxu0 (!%p201_p3), %vm277_vm0, %v1772_v1  ;;  %1524 = vmatprep.mubr.msk.bf16.mxu1 (!%p201_p3), %vm277_vm0, %v1773_v2 }
   0xb   : > { %1521 = vmatmul.mubr.msk.bf16.vlgmr.msra.gmra.mrb[0].mxu0 (!%p201_p3), %vm277_vm0, %v1774_v3  ;;  %1525 = vmatmul.mubr.msk.bf16.vlgmr.msra.gmra.mrb[0].mxu1 (!%p201_p3), %vm277_vm0, %v1775_v4 }
   0xe   : > { %vm361_vm1 = vcmask (%p355_p4), 287744   ;;  %vm363_vm2 = vcmask (%p355_p4), 74752   ;;  %v1806_v13 = vmov (%p355_p4), 0.0  }
   0xf   : > { %362 = vst.msk [vmem:[#allocation2] sm:$0x3] (%p355_p4), %vm361_vm1, %v1806_v13 }
  0x10   : > { %364 = vst.msk [vmem:[#allocation3] sm:$0x3] (%p355_p4), %vm363_vm2, %v1806_v13 }
  0xdb   : > { %360 = sbr.rel (!%p355_p4) target bundleno = 226 (0xe2), region = 44 }
  0xde   : > { %v1883_v5 = vpop.f32.mrb[0].mxu0  ;;  %v1885_v6 = vpop.f32.mrb[0].mxu1 }
  0xdf   : > { %v1887_v7 = vpop.f32.mrb[1].mxu0  ;;  %v1889_v8 = vpop.f32.mrb[1].mxu1 }
  0xe0   : > { %v1891_v9 = vpop.f32.mrb[2].mxu0  ;;  %v1893_v10 = vpop.f32.mrb[2].mxu1 }
  0xe1   : > { %v1895_v11 = vpop.f32.mrb[3].mxu0  ;;  %v1897_v12 = vpop.f32.mrb[3].mxu1 }
  0xe2 PF: > { %p1400_p5 = scmp.ge.s32.totalorder %s1796_s18, 2 }
  0xe3   : > { %vm369_vm3 = vcmask (!%p1400_p5), 15360   ;;  %v1807_v14 = vmov (!%p1400_p5), 0.0  }
  0xe4   : > { %368 = sbr.rel (%p1400_p5) target bundleno = 235 (0xeb), region = 48  ;;  %370 = vst.msk [vmem:[%s2100_s5] sm:$0xff] (!%p1400_p5), %vm369_vm3, %v1807_v14  ;;  %371 = vst.msk [vmem:[%s2100_s5 + $0x8] sm:$0xff] (!%p1400_p5), %vm369_vm3, %v1807_v14 }
  0xe5   : > { %372 = vst.msk [vmem:[%s2100_s5 + $0x10] sm:$0xff] (!%p1400_p5), %vm369_vm3, %v1807_v14  ;;  %373 = vst.msk [vmem:[%s2100_s5 + $0x18] sm:$0xff] (!%p1400_p5), %vm369_vm3, %v1807_v14 }
  0xe6   : > { %374 = vst.msk [vmem:[%s2100_s5 + $0x20] sm:$0xff] (!%p1400_p5), %vm369_vm3, %v1807_v14  ;;  %375 = vst.msk [vmem:[%s2100_s5 + $0x28] sm:$0xff] (!%p1400_p5), %vm369_vm3, %v1807_v14 }
  0xe7   : > { %376 = vst.msk [vmem:[%s2100_s5 + $0x30] sm:$0xff] (!%p1400_p5), %vm369_vm3, %v1807_v14  ;;  %377 = vst.msk [vmem:[%s2100_s5 + $0x38] sm:$0xff] (!%p1400_p5), %vm369_vm3, %v1807_v14 }
  0xeb PF: > { %p1401_p6 = scmp.ne.s32.totalorder %s1796_s18, 0 }
  0xec   : > { %v1665_v15 = vpack.c.bf16 (!%p1401_p6), %v1895_v11, %v1887_v7  ;;  %v455_v16 = vmul.f32 (!%p1401_p6), %v1887_v7, %v1887_v7  ;;  %v456_v17 = vmul.f32 (!%p1401_p6), %v1895_v11, %v1895_v11  ;;  %v1808_v18 = vmov (!%p1401_p6), 0.0|0.0   ;;  %v533_v34 = vld [vmem:[#allocation2] sm:$0x1] (!%p1401_p6)  ;;  %v537_v36 = vld [vmem:[#allocation2 + $0x1] sm:$0x1] (!%p1401_p6) }
  0xed   : > { %380 = sbr.rel (%p1401_p6) target bundleno = 470 (0x1d6), region = 52  ;;  %1664 = vmatprep.subr.bf16.mxu0 (!%p1401_p6), %v1808_v18  ;;  %1676 = vmatprep.subr.bf16.mxu1 (!%p1401_p6), %v1808_v18  ;;  %v457_v19 = vmul.f32 (!%p1401_p6), %v1883_v5, %v1883_v5  ;;  %v458_v20 = vmul.f32 (!%p1401_p6), %v1891_v9, %v1891_v9  ;;  %v1668_v22 = vpack.c.bf16 (!%p1401_p6), %v1891_v9, %v1883_v5  ;;  %vm1809_vm4 = vmmov (!%p1401_p6), 0  }
  0xee   : > { %1666 = vmatpush3.bf16.msra.mxu0 (!%p1401_p6), %v1665_v15  ;;  %v1677_v21 = vpack.c.bf16 (!%p1401_p6), %v456_v17, %v455_v16  ;;  %v459_v24 = vmul.f32 (!%p1401_p6), %v1889_v8, %v1889_v8  ;;  %v460_v25 = vmul.f32 (!%p1401_p6), %v1897_v12, %v1897_v12  ;;  %v1810_v26 = vmov (!%p1401_p6), 0.0  }
  0xef   : > { %1667 = vmatprep.subr.bf16.mxu0 (!%p1401_p6), %v1808_v18  ;;  %v1680_v23 = vpack.c.bf16 (!%p1401_p6), %v458_v20, %v457_v19  ;;  %1544 = vmatprep.mubr.msk.f32.mxu0 (!%p1401_p6), %vm1809_vm4, %v1810_v26  ;;  %v1671_v27 = vpack.c.bf16 (!%p1401_p6), %v1897_v12, %v1889_v8  ;;  %v461_v29 = vmul.f32 (!%p1401_p6), %v1885_v6, %v1885_v6  ;;  %vm381_vm5 = vcmask (!%p1401_p6), 523264  }
  0xf0   : > { %1678 = vmatpush3.bf16.msra.mxu1 (!%p1401_p6), %v1677_v21  ;;  %1563 = vmatprep.mubr.msk.f32.mxu1 (!%p1401_p6), %vm1809_vm4, %v1810_v26  ;;  %v1683_v28 = vpack.c.bf16 (!%p1401_p6), %v460_v25, %v459_v24  ;;  %v462_v30 = vmul.f32 (!%p1401_p6), %v1893_v10, %v1893_v10  ;;  %v1674_v31 = vpack.c.bf16 (!%p1401_p6), %v1893_v10, %v1885_v6  ;;  %v1811_v33 = vmov (!%p1401_p6), 1.0  }
  0xf1   : > { %1679 = vmatprep.subr.bf16.mxu1 (!%p1401_p6), %v1808_v18  ;;  %vm535_vm6 = vcmask (!%p1401_p6), 286720  }
  0xf2   : > { %1669 = vmatpush3.bf16.msra.mxu0 (!%p1401_p6), %v1668_v22  ;;  %v1686_v32 = vpack.c.bf16 (!%p1401_p6), %v462_v30, %v461_v29 }
  0xf3   : > { %1670 = vmatprep.subr.bf16.mxu0 (!%p1401_p6), %v1808_v18 }
  0xf4   : > { %1681 = vmatpush3.bf16.msra.mxu1 %v1680_v23 }
  0xf5   : > { %1682 = vmatprep.subr.bf16.mxu1 %v1808_v18 }
  0xf6   : > { %1672 = vmatpush3.bf16.msra.mxu0 %v1671_v27 }
  0xf7   : > { %1673 = vmatprep.subr.bf16.mxu0 %v1808_v18 }
  0xf8   : > { %1684 = vmatpush3.bf16.msra.mxu1 %v1683_v28 }
  0xf9   : > { %1685 = vmatprep.subr.bf16.mxu1 %v1808_v18 }
  0xfa   : > { %1675 = vmatpush3.bf16.msra.mxu0 %v1674_v31 }
  0xfc   : > { %1687 = vmatpush3.bf16.msra.mxu1 %v1686_v32 }
  0xfd   : > { %1545 = vmatmul.mubr.msk.f32.vlgmr.msra.gmra.mrb[0].mxu0 %vm381_vm5, %v1811_v33 }
  0xff   : > { %1564 = vmatmul.mubr.msk.f32.vlgmr.msra.gmra.mrb[0].mxu1 %vm381_vm5, %v1811_v33 }
 0x1d0   : > { %v451_v35 = vpop.f32.mrb[0].mxu0 }
 0x1d1   : > { %v534_v37 = vadd.f32 %v533_v34, %v451_v35  ;;  %v1546_v38 = vpop.f32.mrb[1].mxu0 }
 0x1d2   : > { %v529_v39 = vpop.f32.mrb[0].mxu1 }
 0x1d3   : > { %536 = vst.msk [vmem:[#allocation2] sm:$0x1] %vm535_vm6, %v534_v37  ;;  %v538_v40 = vadd.f32 %v537_v36, %v529_v39  ;;  %v1565_v41 = vpop.f32.mrb[1].mxu1 }
 0x1d5   : > { %539 = vst.msk [vmem:[#allocation2 + $0x1] sm:$0x1] %vm535_vm6, %v538_v40 }
 0x1d6 PF: > { %p1404_p7 = scmp.ne.s32.totalorder %s1796_s18, 1 }
 0x1d7   : > { %v606_v42 = vld [vmem:[%s2097_s2] sm:$0xff] (!%p1404_p7)  ;;  %v607_v43 = vld [vmem:[%s2097_s2 + $0x8] sm:$0xff] (!%p1404_p7)  ;;  %v608_v44 = vld [vmem:[%s2097_s2 + $0x10] sm:$0xff] (!%p1404_p7)  ;;  %vm636_vm7 = vcmask (!%p1404_p7), 1043456   ;;  %v558_v57 = vlaneseq (!%p1404_p7)  ;;  %vm611_vm8 = vcmask (!%p1404_p7), 293888   ;;  %vm1813_vm1 = vmmov (!%p1404_p7), 0  }
 0x1d8   : > { %543 = sbr.rel (%p1404_p7) target bundleno = 957 (0x3bd), region = 56  ;;  %v1688_v45 = vpack.c.bf16 (!%p1404_p7), %v607_v43, %v606_v42  ;;  %v609_v46 = vld [vmem:[%s2097_s2 + $0x18] sm:$0xff] (!%p1404_p7)  ;;  %v610_v53 = vld [vmem:[%s2097_s2 + $0x20] sm:$0xf] (!%p1404_p7)  ;;  %vm745_vm2 = vcmask (!%p1404_p7), 523264   ;;  %vm899_vm3 = vcmask (!%p1404_p7), 73728  }
 0x1d9   : > { %v1692_v48 = vpack.c.bf16 (!%p1404_p7), %v609_v46, %v608_v44  ;;  %v559_v58 = vshrl.u32 (!%p1404_p7), %v558_v57, 7  ;;  %v551_v59 = vld [vmem:[%s2099_s4] sm:$0x1] (!%p1404_p7)  ;;  %v555_v63 = vld [vmem:[%s2099_s4 + $0x1] sm:$0x1] (!%p1404_p7)  ;;  %v1812_v44 = vmov (!%p1404_p7), 0.0|0.0  }
 0x1da   : > { %v544_v47 = vld [vmem:[#allocation2] sm:$0x1] (!%p1404_p7)  ;;  %1689 = vmatprep.subr.bf16.mxu0 (!%p1404_p7), %v1688_v45  ;;  %1696 = vmatprep.subr.bf16.mxu1 (!%p1404_p7), %v1812_v44 }
 0x1db   : > { %v545_v49 = vmul.f32 (!%p1404_p7), 0.015625, %v544_v47  ;;  %1691 = vmatpush3.bf16.msra.mxu0 (!%p1404_p7), %v1688_v45  ;;  %v560_v60 = vsub.s32 (!%p1404_p7), 0, %v559_v58  ;;  %v1814_v45 = vmov (!%p1404_p7), 0.0  }
 0x1dc   : > { %v546_v50 = vld [vmem:[#allocation2 + $0x1] sm:$0x1] (!%p1404_p7)  ;;  %1693 = vmatprep.subr.bf16.mxu0 (!%p1404_p7), %v1692_v48  ;;  %1604 = vmatprep.mubr.msk.f32.mxu1 (!%p1404_p7), %vm1813_vm1, %v1814_v45 }
 0x1dd   : > { %v547_v51 = vmul.f32 (!%p1404_p7), 0.015625, %v546_v50  ;;  %v548_v52 = vmul.f32 (!%p1404_p7), %v545_v49, %v545_v49 }
 0x1df   : > { %v549_v54 = vsub.f32 %v547_v51, %v548_v52  ;;  %1695 = vmatpush3.bf16.msra.mxu0 %v1692_v48 }
 0x1e0   : > { %1574 = vmatprep.subr.msk.mxu0 %vm636_vm7, %v610_v53 }
 0x1e1   : > { %v550_v55 = vmax.f32 %v549_v54, 0.0 }
 0x1e3   : > { %v552_v56 = vadd.f32 1e-05, %v550_v55  ;;  %1575 = vmatpush3.msk.msra.mxu0 %vm636_vm7, %v610_v53 }
 0x1e4   : > { %1708 = vmatprep.subr.bf16.mxu0 %v1812_v44 }
 0x1e5   : > { %1776 = vrsqrt.f32 %v552_v56 }
 0x1ef   : > { %v1777_v61 = vpop.eup %1776 }
 0x1f0   : > { %v554_v62 = vmul.f32 %v1777_v61, %v551_v59 }
 0x1f2   : > { %v556_v0 = vmul.f32 %v554_v62, %v545_v49  ;;  %v561_v1 = vrot.slane %v554_v62, %v560_v60 }
 0x1f4   : > { %v557_v2 = vsub.f32 %v555_v63, %v556_v0  ;;  %v562_v3 = vmul.f32 %v561_v1, %v1887_v7  ;;  %v563_v4 = vmul.f32 %v561_v1, %v1895_v11  ;;  %v564_v13 = vmul.f32 %v1883_v5, %v561_v1 }
 0x1f5   : > { %v565_v14 = vmul.f32 %v1891_v9, %v561_v1  ;;  %v566_v15 = vmul.f32 %v561_v1, %v1889_v8  ;;  %v567_v16 = vmul.f32 %v561_v1, %v1897_v12  ;;  %v568_v18 = vmul.f32 %v1885_v6, %v561_v1 }
 0x1f6   : > { %v573_v17 = vrot.slane %v557_v2, %v560_v60  ;;  %v569_v25 = vmul.f32 %v1893_v10, %v561_v1 }
 0x1f8   : > { %v574_v19 = vadd.f32 %v573_v17, %v562_v3  ;;  %v575_v20 = vadd.f32 %v573_v17, %v563_v4  ;;  %v576_v21 = vadd.f32 %v573_v17, %v564_v13  ;;  %v577_v22 = vadd.f32 %v573_v17, %v565_v14 }
 0x1f9   : > { %v578_v23 = vadd.f32 %v573_v17, %v566_v15  ;;  %v579_v24 = vadd.f32 %v573_v17, %v567_v16  ;;  %v580_v30 = vadd.f32 %v573_v17, %v568_v18  ;;  %v581_v37 = vadd.f32 %v573_v17, %v569_v25  ;;  %v897_v15 = vld [vmem:[#allocation3] sm:$0x1]  ;;  %v901_v17 = vld [vmem:[#allocation3 + $0x1] sm:$0x1] }
 0x1fa   : > { %vm582_vm9 = vcmp.ge.f32.partialorder %v574_v19, 0.0  ;;  %v590_v26 = vmul.f32 0.01, %v574_v19  ;;  %vm583_vm10 = vcmp.ge.f32.partialorder %v575_v20, 0.0  ;;  %v591_v27 = vmul.f32 0.01, %v575_v20 }
 0x1fb   : > { %vm584_vm11 = vcmp.ge.f32.partialorder %v576_v21, 0.0  ;;  %v592_v28 = vmul.f32 0.01, %v576_v21  ;;  %v593_v29 = vmul.f32 0.01, %v577_v22  ;;  %vm585_vm12 = vcmp.ge.f32.partialorder %v577_v22, 0.0 }
 0x1fc   : > { %v598_v31 = vsel %vm582_vm9, %v574_v19, %v590_v26  ;;  %v599_v32 = vsel %vm583_vm10, %v575_v20, %v591_v27  ;;  %v594_v33 = vmul.f32 0.01, %v578_v23  ;;  %vm586_vm13 = vcmp.ge.f32.partialorder %v578_v23, 0.0 }
 0x1fd   : > { %1576 = vmatprep.mubr.msk.f32.mxu0 %vm611_vm8, %v598_v31  ;;  %v600_v34 = vsel %vm584_vm11, %v576_v21, %v592_v28  ;;  %v601_v35 = vsel %vm585_vm12, %v577_v22, %v593_v29  ;;  %v595_v36 = vmul.f32 0.01, %v579_v24  ;;  %vm587_vm14 = vcmp.ge.f32.partialorder %v579_v24, 0.0 }
 0x1fe   : > { %1577 = vmatmul.mubr.msk.f32.vlgmr.msra.gmra.mrb[0].mxu0 %vm611_vm8, %v599_v32  ;;  %v602_v38 = vsel %vm586_vm13, %v578_v23, %v594_v33  ;;  %v596_v39 = vmul.f32 0.01, %v580_v30  ;;  %vm588_vm15 = vcmp.ge.f32.partialorder %v580_v30, 0.0  ;;  %v597_v41 = vmul.f32 0.01, %v581_v37 }
 0x1ff   : > { %1579 = vmatprep.mubr.msk.f32.mxu0 %vm611_vm8, %v600_v34  ;;  %v603_v40 = vsel %vm587_vm14, %v579_v24, %v595_v36  ;;  %vm589_vm0 = vcmp.ge.f32.partialorder %v581_v37, 0.0  ;;  %v1815_v14 = vmov 1.0  }
 0x200   : > { %v604_v42 = vsel %vm588_vm15, %v580_v30, %v596_v39  ;;  %v605_v43 = vsel %vm589_vm0, %v581_v37, %v597_v41 }
 0x202   : > { %1580 = vmatmul.mubr.msk.f32.gmra.mrb[2].mxu0 %vm611_vm8, %v601_v35 }
 0x203   : > { %1582 = vmatprep.mubr.msk.f32.mxu0 %vm611_vm8, %v602_v38 }
 0x206   : > { %1583 = vmatmul.mubr.msk.f32.gmra.mrb[4].mxu0 %vm611_vm8, %v603_v40 }
 0x207   : > { %1585 = vmatprep.mubr.msk.f32.mxu0 %vm611_vm8, %v604_v42 }
 0x20a   : > { %1586 = vmatmul.mubr.msk.f32.gmra.mrb[6].mxu0 %vm611_vm8, %v605_v43 }
 0x20b   : > { %1623 = vmatprep.mubr.msk.f32.mxu0 %vm1813_vm1, %v1814_v45 }
 0x2d1   : > { %v1578_v46 = vpop.f32.mrb[0].mxu0 }
 0x2d2   : > { %v820_v47 = vmul.f32 %v1578_v46, %v1578_v46  ;;  %v706_v48 = vpop.f32.mrb[1].mxu0 }
 0x2d3   : > { %v819_v49 = vmul.f32 %v706_v48, %v706_v48  ;;  %v1697_v50 = vpack.c.bf16 %v1578_v46, %v706_v48 }
 0x2d5   : > { %v1709_v51 = vpack.c.bf16 %v820_v47, %v819_v49  ;;  %v1581_v52 = vpop.f32.mrb[2].mxu0  ;;  %1698 = vmatpush3.bf16.msra.mxu1 %v1697_v50 }
 0x2d6   : > { %v822_v53 = vmul.f32 %v1581_v52, %v1581_v52  ;;  %v716_v54 = vpop.f32.mrb[3].mxu0  ;;  %1699 = vmatprep.subr.bf16.mxu1 %v1812_v44 }
 0x2d7   : > { %v1700_v55 = vpack.c.bf16 %v1581_v52, %v716_v54  ;;  %v821_v56 = vmul.f32 %v716_v54, %v716_v54  ;;  %1710 = vmatpush3.bf16.msra.mxu0 %v1709_v51 }
 0x2d8   : > { %1711 = vmatprep.subr.bf16.mxu0 %v1812_v44 }
 0x2d9   : > { %v1712_v57 = vpack.c.bf16 %v822_v53, %v821_v56  ;;  %v1584_v58 = vpop.f32.mrb[4].mxu0  ;;  %1701 = vmatpush3.bf16.msra.mxu1 %v1700_v55 }
 0x2da   : > { %v824_v59 = vmul.f32 %v1584_v58, %v1584_v58  ;;  %v726_v60 = vpop.f32.mrb[5].mxu0  ;;  %1702 = vmatprep.subr.bf16.mxu1 %v1812_v44 }
 0x2db   : > { %v1703_v61 = vpack.c.bf16 %v1584_v58, %v726_v60  ;;  %v823_v62 = vmul.f32 %v726_v60, %v726_v60  ;;  %1713 = vmatpush3.bf16.msra.mxu0 %v1712_v57 }
 0x2dc   : > { %1714 = vmatprep.subr.bf16.mxu0 %v1812_v44 }
 0x2dd   : > { %v1715_v63 = vpack.c.bf16 %v824_v59, %v823_v62  ;;  %v1587_v0 = vpop.f32.mrb[6].mxu0  ;;  %1704 = vmatpush3.bf16.msra.mxu1 %v1703_v61 }
 0x2de   : > { %v826_v1 = vmul.f32 %v1587_v0, %v1587_v0  ;;  %v736_v2 = vpop.f32.mrb[7].mxu0  ;;  %1705 = vmatprep.subr.bf16.mxu1 %v1812_v44 }
 0x2df   : > { %v1706_v3 = vpack.c.bf16 %v1587_v0, %v736_v2  ;;  %v825_v4 = vmul.f32 %v736_v2, %v736_v2  ;;  %1716 = vmatpush3.bf16.msra.mxu0 %v1715_v63 }
 0x2e0   : > { %1717 = vmatprep.subr.bf16.mxu0 %v1812_v44 }
 0x2e1   : > { %v1718_v13 = vpack.c.bf16 %v826_v1, %v825_v4  ;;  %1707 = vmatpush3.bf16.msra.mxu1 %v1706_v3 }
 0x2e3   : > { %1719 = vmatpush3.bf16.msra.mxu0 %v1718_v13 }
 0x2e4   : > { %1605 = vmatmul.mubr.msk.f32.vlgmr.msra.gmra.mrb[0].mxu1 %vm745_vm2, %v1815_v14 }
 0x2e6   : > { %1624 = vmatmul.mubr.msk.f32.vlgmr.msra.gmra.mrb[8].mxu0 %vm745_vm2, %v1815_v14 }
 0x3b7   : > { %v815_v16 = vpop.f32.mrb[0].mxu1 }
 0x3b8   : > { %v898_v18 = vadd.f32 %v897_v15, %v815_v16  ;;  %v1606_v19 = vpop.f32.mrb[1].mxu1 }
 0x3b9   : > { %v893_v20 = vpop.f32.mrb[8].mxu0 }
 0x3ba   : > { %900 = vst.msk [vmem:[#allocation3] sm:$0x1] %vm899_vm3, %v898_v18  ;;  %v902_v21 = vadd.f32 %v901_v17, %v893_v20  ;;  %v1625_v22 = vpop.f32.mrb[9].mxu0 }
 0x3bc   : > { %903 = vst.msk [vmem:[#allocation3 + $0x1] sm:$0x1] %vm899_vm3, %v902_v21 }
 0x3bd PF: > { %p1416_p8 = scmp.ne.s32.totalorder %s1796_s18, 2 }
 0x3be   : > { %v970_v23 = vld [vmem:[%s2097_s2] sm:$0xff] (!%p1416_p8)  ;;  %v971_v24 = vld [vmem:[%s2097_s2 + $0x8] sm:$0xff] (!%p1416_p8)  ;;  %v972_v25 = vld [vmem:[%s2097_s2 + $0x10] sm:$0xff] (!%p1416_p8)  ;;  %vm1000_vm4 = vcmask (!%p1416_p8), 1043456   ;;  %v922_v38 = vlaneseq (!%p1416_p8)  ;;  %vm975_vm5 = vcmask (!%p1416_p8), 293888   ;;  %vm1203_vm14 = vcmask (!%p1416_p8), 1041408  }
 0x3bf   : > { %907 = sbr.rel (%p1416_p8) target bundleno = 1444 (0x5a4), region = 60  ;;  %v1720_v26 = vpack.c.bf16 (!%p1416_p8), %v971_v24, %v970_v23  ;;  %v973_v27 = vld [vmem:[%s2097_s2 + $0x18] sm:$0xff] (!%p1416_p8)  ;;  %v908_v28 = vld [vmem:[#allocation2] sm:$0x1] (!%p1416_p8)  ;;  %v910_v31 = vld [vmem:[#allocation2 + $0x1] sm:$0x1] (!%p1416_p8) }
 0x3c0   : > { %v1724_v29 = vpack.c.bf16 (!%p1416_p8), %v973_v27, %v972_v25  ;;  %v909_v30 = vmul.f32 (!%p1416_p8), 0.015625, %v908_v28  ;;  %v911_v32 = vmul.f32 (!%p1416_p8), 0.015625, %v910_v31  ;;  %v974_v34 = vld [vmem:[%s2097_s2 + $0x20] sm:$0xf] (!%p1416_p8)  ;;  %v923_v39 = vshrl.u32 (!%p1416_p8), %v922_v38, 7 }
 0x3c1   : > { %1721 = vmatprep.subr.bf16.mxu0 (!%p1416_p8), %v1720_v26  ;;  %v915_v40 = vld [vmem:[%s2099_s4] sm:$0x1] (!%p1416_p8)  ;;  %v919_v44 = vld [vmem:[%s2099_s4 + $0x1] sm:$0x1] (!%p1416_p8)  ;;  %v1172_v18 = vld [vmem:[%s2098_s3 + $0x8] sm:$0x3] (!%p1416_p8) }
 0x3c2   : > { %1723 = vmatpush3.bf16.msra.mxu0 (!%p1416_p8), %v1720_v26  ;;  %v912_v33 = vmul.f32 (!%p1416_p8), %v909_v30, %v909_v30  ;;  %v2006_v41 = vsub.s32 (!%p1416_p8), 0, %v923_v39  ;;  %v1171_v17 = vld [vmem:[%s2098_s3] sm:$0xff] (!%p1416_p8)  ;;  %vm1816_vm15 = vmmov (!%p1416_p8), 1   ;;  %vm1178_vm1 = vcmask (!%p1416_p8), 80896  }
 0x3c3   : > { %1725 = vmatprep.subr.bf16.mxu0 (!%p1416_p8), %v1724_v29  ;;  %v1728_v19 = vpack.c.bf16 (!%p1416_p8), %v1172_v18, %v1171_v17  ;;  %vm1729_vm0 = vmpackc.low (!%p1416_p8), %vm1203_vm14, %vm1816_vm15  ;;  %v1109_v20 = vld [vmem:[#allocation3] sm:$0x1] (!%p1416_p8)  ;;  %v1111_v22 = vld [vmem:[#allocation3 + $0x1] sm:$0x1] (!%p1416_p8) }
 0x3c4   : > { %v913_v35 = vsub.f32 (!%p1416_p8), %v911_v32, %v912_v33  ;;  %v1110_v21 = vmul.f32 (!%p1416_p8), 0.015625, %v1109_v20  ;;  %v1112_v23 = vmul.f32 (!%p1416_p8), 0.015625, %v1111_v22  ;;  %v1120_v32 = vld [vmem:[%s2099_s4 + $0x3] sm:$0x1] (!%p1416_p8) }
 0x3c5   : > { %1730 = vmatprep.subr.msk.bf16.mxu1 (!%p1416_p8), %vm1729_vm0, %v1728_v19 }
 0x3c6   : > { %1727 = vmatpush3.bf16.msra.mxu0 %v1724_v29  ;;  %v914_v36 = vmax.f32 %v913_v35, 0.0  ;;  %1733 = vmatpush3.bf16.msk.msra.mxu1 %vm1729_vm0, %v1728_v19  ;;  %v1113_v24 = vmul.f32 %v1110_v21, %v1110_v21  ;;  %v1116_v29 = vld [vmem:[%s2099_s4 + $0x2] sm:$0x1] }
 0x3c7   : > { %1634 = vmatprep.subr.msk.mxu0 %vm1000_vm4, %v974_v34 }
 0x3c8   : > { %v916_v37 = vadd.f32 1e-05, %v914_v36  ;;  %v1114_v25 = vsub.f32 %v1112_v23, %v1113_v24 }
 0x3ca   : > { %1635 = vmatpush3.msk.msra.mxu0 %vm1000_vm4, %v974_v34  ;;  %1778 = vrsqrt.f32 %v916_v37  ;;  %v1115_v26 = vmax.f32 %v1114_v25, 0.0 }
 0x3cc   : > { %v1117_v27 = vadd.f32 1e-05, %v1115_v26 }
 0x3ce   : > { %1780 = vrsqrt.f32 %v1117_v27 }
 0x3d4   : > { %v1779_v42 = vpop.eup %1778 }
 0x3d5   : > { %v918_v43 = vmul.f32 %v1779_v42, %v915_v40 }
 0x3d7   : > { %v920_v45 = vmul.f32 %v918_v43, %v909_v30  ;;  %v925_v46 = vrot.slane %v918_v43, %v2006_v41 }
 0x3d8   : > { %v1781_v28 = vpop.eup %1780 }
 0x3d9   : > { %v921_v47 = vsub.f32 %v919_v44, %v920_v45  ;;  %v926_v48 = vmul.f32 %v925_v46, %v1887_v7  ;;  %v927_v49 = vmul.f32 %v925_v46, %v1895_v11  ;;  %v928_v50 = vmul.f32 %v1883_v5, %v925_v46 }
 0x3da   : > { %v929_v51 = vmul.f32 %v1891_v9, %v925_v46  ;;  %v930_v52 = vmul.f32 %v925_v46, %v1889_v8  ;;  %v931_v53 = vmul.f32 %v925_v46, %v1897_v12  ;;  %v932_v55 = vmul.f32 %v1885_v6, %v925_v46 }
 0x3db   : > { %v937_v54 = vrot.slane %v921_v47, %v2006_v41  ;;  %v933_v11 = vmul.f32 %v1893_v10, %v925_v46  ;;  %v1119_v30 = vmul.f32 %v1781_v28, %v1116_v29 }
 0x3dd   : > { %v938_v56 = vadd.f32 %v937_v54, %v926_v48  ;;  %v939_v57 = vadd.f32 %v937_v54, %v927_v49  ;;  %v940_v58 = vadd.f32 %v937_v54, %v928_v50  ;;  %v941_v59 = vadd.f32 %v937_v54, %v929_v51 }
 0x3de   : > { %v942_v7 = vadd.f32 %v937_v54, %v930_v52  ;;  %v943_v60 = vadd.f32 %v937_v54, %v931_v53  ;;  %v944_v61 = vadd.f32 %v937_v54, %v932_v55  ;;  %v945_v2 = vadd.f32 %v937_v54, %v933_v11 }
 0x3df   : > { %vm946_vm6 = vcmp.ge.f32.partialorder %v938_v56, 0.0  ;;  %v954_v5 = vmul.f32 0.01, %v938_v56  ;;  %vm947_vm7 = vcmp.ge.f32.partialorder %v939_v57, 0.0  ;;  %v955_v9 = vmul.f32 0.01, %v939_v57 }
 0x3e0   : > { %vm948_vm8 = vcmp.ge.f32.partialorder %v940_v58, 0.0  ;;  %v956_v8 = vmul.f32 0.01, %v940_v58  ;;  %v957_v12 = vmul.f32 0.01, %v941_v59  ;;  %vm949_vm9 = vcmp.ge.f32.partialorder %v941_v59, 0.0 }
 0x3e1   : > { %v962_v62 = vsel %vm946_vm6, %v938_v56, %v954_v5  ;;  %v963_v63 = vsel %vm947_vm7, %v939_v57, %v955_v9  ;;  %v958_v6 = vmul.f32 0.01, %v942_v7  ;;  %vm950_vm10 = vcmp.ge.f32.partialorder %v942_v7, 0.0 }
 0x3e2   : > { %1636 = vmatprep.mubr.msk.f32.mxu0 %vm975_vm5, %v962_v62  ;;  %v964_v0 = vsel %vm948_vm8, %v940_v58, %v956_v8  ;;  %v965_v10 = vsel %vm949_vm9, %v941_v59, %v957_v12  ;;  %v959_v1 = vmul.f32 0.01, %v943_v60  ;;  %vm951_vm11 = vcmp.ge.f32.partialorder %v943_v60, 0.0 }
 0x3e3   : > { %1637 = vmatmul.mubr.msk.f32.vlgmr.msra.gmra.mrb[0].mxu0 %vm975_vm5, %v963_v63  ;;  %v966_v3 = vsel %vm950_vm10, %v942_v7, %v958_v6  ;;  %v960_v4 = vmul.f32 0.01, %v944_v61  ;;  %vm952_vm12 = vcmp.ge.f32.partialorder %v944_v61, 0.0  ;;  %v961_v14 = vmul.f32 0.01, %v945_v2 }
 0x3e4   : > { %1639 = vmatprep.mubr.msk.f32.mxu0 %vm975_vm5, %v964_v0  ;;  %v967_v13 = vsel %vm951_vm11, %v943_v60, %v959_v1  ;;  %vm953_vm13 = vcmp.ge.f32.partialorder %v945_v2, 0.0  ;;  %v1121_v31 = vmul.f32 %v1119_v30, %v1110_v21  ;;  %v1126_v34 = vrot.slane %v1119_v30, %v2006_v41 }
 0x3e5   : > { %v968_v15 = vsel %vm952_vm12, %v944_v61, %v960_v4  ;;  %v969_v16 = vsel %vm953_vm13, %v945_v2, %v961_v14  ;;  %v1426_v4 = vld [vmem:[%s2099_s4 + $0x4] ss:$0 sm:$0xff]  ;;  %vm1312_vm10 = vcmask 15360  }
 0x3e6   : > { %v1122_v33 = vsub.f32 %v1120_v32, %v1121_v31 }
 0x3e7   : > { %1640 = vmatmul.mubr.msk.f32.gmra.mrb[2].mxu0 %vm975_vm5, %v965_v10 }
 0x3e8   : > { %1642 = vmatprep.mubr.msk.f32.mxu0 %vm975_vm5, %v966_v3  ;;  %v1138_v35 = vrot.slane %v1122_v33, %v2006_v41 }
 0x3eb   : > { %1643 = vmatmul.mubr.msk.f32.gmra.mrb[4].mxu0 %vm975_vm5, %v967_v13 }
 0x3ec   : > { %1645 = vmatprep.mubr.msk.f32.mxu0 %vm975_vm5, %v968_v15 }
 0x3ef   : > { %1646 = vmatmul.mubr.msk.f32.gmra.mrb[6].mxu0 %vm975_vm5, %v969_v16 }
 0x4b6   : > { %v1638_v36 = vpop.f32.mrb[0].mxu0 }
 0x4b7   : > { %v1128_v37 = vmul.f32 %v1638_v36, %v1126_v34  ;;  %v1070_v38 = vpop.f32.mrb[1].mxu0 }
 0x4b8   : > { %v1127_v39 = vmul.f32 %v1126_v34, %v1070_v38 }
 0x4b9   : > { %v1140_v40 = vadd.f32 %v1138_v35, %v1128_v37 }
 0x4ba   : > { %v1139_v42 = vadd.f32 %v1138_v35, %v1127_v39  ;;  %v1641_v43 = vpop.f32.mrb[2].mxu0 }
 0x4bb   : > { %v1156_v44 = vmul.f32 0.01, %v1140_v40  ;;  %v1130_v45 = vmul.f32 %v1641_v43, %v1126_v34  ;;  %v1080_v46 = vpop.f32.mrb[3].mxu0  ;;  %vm1148_vm3 = vcmp.ge.f32.partialorder %v1140_v40, 0.0 }
 0x4bc   : > { %v1129_v47 = vmul.f32 %v1126_v34, %v1080_v46  ;;  %vm1147_vm2 = vcmp.ge.f32.partialorder %v1139_v42, 0.0  ;;  %v1155_v48 = vmul.f32 0.01, %v1139_v42 }
 0x4bd   : > { %v1142_v49 = vadd.f32 %v1138_v35, %v1130_v45  ;;  %v1164_v55 = vsel %vm1148_vm3, %v1140_v40, %v1156_v44 }
 0x4be   : > { %v1141_v50 = vadd.f32 %v1138_v35, %v1129_v47  ;;  %v1644_v51 = vpop.f32.mrb[4].mxu0  ;;  %v1163_v52 = vsel %vm1147_vm2, %v1139_v42, %v1155_v48 }
 0x4bf   : > { %v1158_v41 = vmul.f32 0.01, %v1142_v49  ;;  %v1132_v53 = vmul.f32 %v1644_v51, %v1126_v34  ;;  %v1090_v54 = vpop.f32.mrb[5].mxu0  ;;  %1652 = vmatprep.mubr.msk.f32.mxu1 %vm1178_vm1, %v1163_v52  ;;  %vm1150_vm5 = vcmp.ge.f32.partialorder %v1142_v49, 0.0 }
 0x4c0   : > { %v1157_v56 = vmul.f32 0.01, %v1141_v50  ;;  %v1131_v57 = vmul.f32 %v1126_v34, %v1090_v54  ;;  %1653 = vmatmul.mubr.msk.f32.vlgmr.msra.gmra.mrb[0].mxu1 %vm1178_vm1, %v1164_v55  ;;  %vm1149_vm4 = vcmp.ge.f32.partialorder %v1141_v50, 0.0 }
 0x4c1   : > { %v1144_v58 = vadd.f32 %v1138_v35, %v1132_v53  ;;  %v1166_v8 = vsel %vm1150_vm5, %v1142_v49, %v1158_v41 }
 0x4c2   : > { %v1143_v59 = vadd.f32 %v1138_v35, %v1131_v57  ;;  %v1647_v7 = vpop.f32.mrb[6].mxu0  ;;  %v1165_v60 = vsel %vm1149_vm4, %v1141_v50, %v1157_v56 }
 0x4c3   : > { %v1160_v11 = vmul.f32 0.01, %v1144_v58  ;;  %v1134_v5 = vmul.f32 %v1647_v7, %v1126_v34  ;;  %v1100_v9 = vpop.f32.mrb[7].mxu0  ;;  %1655 = vmatprep.mubr.msk.f32.mxu1 %vm1178_vm1, %v1165_v60  ;;  %vm1152_vm7 = vcmp.ge.f32.partialorder %v1144_v58, 0.0 }
 0x4c4   : > { %v1159_v12 = vmul.f32 0.01, %v1143_v59  ;;  %v1133_v61 = vmul.f32 %v1126_v34, %v1100_v9  ;;  %1656 = vmatmul.mubr.msk.f32.gmra.mrb[2].mxu1 %vm1178_vm1, %v1166_v8  ;;  %vm1151_vm6 = vcmp.ge.f32.partialorder %v1143_v59, 0.0 }
 0x4c5   : > { %v1146_v62 = vadd.f32 %v1138_v35, %v1134_v5  ;;  %v1168_v10 = vsel %vm1152_vm7, %v1144_v58, %v1160_v11 }
 0x4c6   : > { %v1145_v63 = vadd.f32 %v1138_v35, %v1133_v61  ;;  %v1167_v6 = vsel %vm1151_vm6, %v1143_v59, %v1159_v12 }
 0x4c7   : > { %v1162_v0 = vmul.f32 0.01, %v1146_v62  ;;  %1658 = vmatprep.mubr.msk.f32.mxu1 %vm1178_vm1, %v1167_v6  ;;  %vm1154_vm9 = vcmp.ge.f32.partialorder %v1146_v62, 0.0 }
 0x4c8   : > { %v1161_v1 = vmul.f32 0.01, %v1145_v63  ;;  %1659 = vmatmul.mubr.msk.f32.gmra.mrb[4].mxu1 %vm1178_vm1, %v1168_v10  ;;  %vm1153_vm8 = vcmp.ge.f32.partialorder %v1145_v63, 0.0 }
 0x4c9   : > { %v1170_v3 = vsel %vm1154_vm9, %v1146_v62, %v1162_v0 }
 0x4ca   : > { %v1169_v2 = vsel %vm1153_vm8, %v1145_v63, %v1161_v1 }
 0x4cb   : > { %1661 = vmatprep.mubr.msk.f32.mxu1 %vm1178_vm1, %v1169_v2 }
 0x4cc   : > { %1662 = vmatmul.mubr.msk.f32.gmra.mrb[6].mxu1 %vm1178_vm1, %v1170_v3 }
 0x593   : > { %v1654_v13 = vpop.f32.mrb[0].mxu1 }
 0x594   : > { %v1279_v14 = vadd.f32 %v1654_v13, %v1426_v4  ;;  %v1273_v15 = vpop.f32.mrb[1].mxu1 }
 0x595   : > { %v1274_v16 = vadd.f32 %v1426_v4, %v1273_v15 }
 0x596   : > { %1314 = vst.msk [vmem:[%s2100_s5 + $0x8] sm:$0xff] %vm1312_vm10, %v1279_v14 }
 0x597   : > { %1313 = vst.msk [vmem:[%s2100_s5] sm:$0xff] %vm1312_vm10, %v1274_v16  ;;  %v1657_v17 = vpop.f32.mrb[2].mxu1 }
 0x598   : > { %v1289_v18 = vadd.f32 %v1657_v17, %v1426_v4  ;;  %v1283_v19 = vpop.f32.mrb[3].mxu1 }
 0x599   : > { %v1284_v20 = vadd.f32 %v1426_v4, %v1283_v19 }
 0x59a   : > { %1316 = vst.msk [vmem:[%s2100_s5 + $0x18] sm:$0xff] %vm1312_vm10, %v1289_v18 }
 0x59b   : > { %1315 = vst.msk [vmem:[%s2100_s5 + $0x10] sm:$0xff] %vm1312_vm10, %v1284_v20  ;;  %v1660_v21 = vpop.f32.mrb[4].mxu1 }
 0x59c   : > { %v1299_v22 = vadd.f32 %v1660_v21, %v1426_v4  ;;  %v1293_v23 = vpop.f32.mrb[5].mxu1 }
 0x59d   : > { %v1294_v24 = vadd.f32 %v1426_v4, %v1293_v23 }
 0x59e   : > { %1318 = vst.msk [vmem:[%s2100_s5 + $0x28] sm:$0xff] %vm1312_vm10, %v1299_v22 }
 0x59f   : > { %1317 = vst.msk [vmem:[%s2100_s5 + $0x20] sm:$0xff] %vm1312_vm10, %v1294_v24  ;;  %v1663_v25 = vpop.f32.mrb[6].mxu1 }
 0x5a0   : > { %v1309_v26 = vadd.f32 %v1663_v25, %v1426_v4  ;;  %v1303_v27 = vpop.f32.mrb[7].mxu1 }
 0x5a1   : > { %v1304_v28 = vadd.f32 %v1426_v4, %v1303_v27 }
 0x5a2   : > { %1320 = vst.msk [vmem:[%s2100_s5 + $0x38] sm:$0xff] %vm1312_vm10, %v1309_v26 }
 0x5a3   : > { %1319 = vst.msk [vmem:[%s2100_s5 + $0x30] sm:$0xff] %vm1312_vm10, %v1304_v28 }
 0x5a4 PF: > { %s15_s20 = sadd.s32 1, %s1804_s20   ;;  %s2101_s18 = smov %s1800_s19 }
 0x5a5   : > { %p12_p9 = scmp.ge.s32.totalorder %s15_s20, 5   ;;  %s2102_s19 = smov %s2104_s21 }
 0x5a7   :  { %14 = sbr.rel (!%p12_p9) target bundleno = 2 (0x2), region = 90 }

</bundles_post_ra>
